<compile_context>
chip_gen: v6e
topology: v6e:2x2x1
jax: 0.10.0
libtpu: 0.0.40
codegen_flags: <defaults>
</compile_context>

<pallas_src>
import jax
import jax.numpy as jnp
from jax.experimental import pallas as pl
from jax.experimental.pallas import tpu as pltpu


def _actnorm_kernel(x_ref, loc_ref, scale_ref, h_ref):
    # x_ref/h_ref:        (TR, TL) tile of the lane-dense 2-D view.
    # loc_ref/scale_ref:  (TR, 1) or (1, TL) f32 parameter tile (broadcasts).
    x = x_ref[...].astype(jnp.float32)
    h_ref[...] = (scale_ref[...] * (x + loc_ref[...])).astype(h_ref.dtype)


def _hw_params():
    """Generation-aware (block_bytes_target, vmem_capacity_bytes_or_None, num_cores)."""
    try:
        kind = jax.devices()[0].device_kind.lower()
    except Exception:
        kind = ""
    vmem_cap = None
    try:
        vmem_cap = getattr(pltpu.get_tpu_info(), "vmem_capacity_bytes", None)
    except Exception:
        vmem_cap = None

    if vmem_cap is not None and vmem_cap <= (64 << 20):
        # v7x-class: 64 MiB VMEM, ~3.2 TB/s HBM, 2 TensorCores -> big blocks.
        return 8 << 20, vmem_cap, 2
    if "v6" in kind or "v7" in kind:
        # v6e: 128 MiB VMEM, 32 MiB default scoped limit -> 16 MiB resident ok.
        return 4 << 20, vmem_cap, 1
    # v5e / unknown: 16 MiB default scoped limit -> keep resident ~8 MiB.
    return 2 << 20, vmem_cap, 1


def _sublane_pack(dtype):
    """Row granularity: 8 for 32-bit, 16 for bf16/f16, 32 for int8/fp8."""
    return max(8, 32 // jnp.dtype(dtype).itemsize)


def _choose_tiles(R, L, itemsize, block_bytes, pack):
    """Pick (row_tile, lane_tile) obeying the (sublane, 128) layout rule while
    keeping a single x block <= block_bytes."""
    # Lane (last-dim) tile: full L when small enough, else a multiple of 128.
    if L <= 128 or L * itemsize * pack <= block_bytes:
        tl = L
    else:
        tl = max(128, (block_bytes // (pack * itemsize)) // 128 * 128)
        if tl >= L:
            tl = L
    # Row (second-last) tile: multiple of the sublane packing, or full R.
    if R <= pack:
        tr = R
    else:
        max_rows = max(pack, block_bytes // max(1, tl * itemsize))
        tr = R if max_rows >= R else max(pack, (max_rows // pack) * pack)
    return tr, tl


def _maybe_split_for_cores(R, L, tr, tl, itemsize, pack, ncores):
    """On multi-TensorCore chips avoid a (1, 1) grid for non-tiny inputs."""
    if ncores <= 1 or tr < R or tl < L:
        return tr, tl
    if R * L * itemsize <= (1 << 20):            # tiny: one block is fine
        return tr, tl
    if R >= 2 * pack:                            # split along rows first
        half = (R + 1) // 2
        new_tr = max(pack, ((half + pack - 1) // pack) * pack)
        if new_tr >= R:
            new_tr = max(pack, (R // 2 // pack) * pack)
        return new_tr, tl
    if L >= 256:                                 # else split along lanes
        half = (L + 1) // 2
        new_tl = max(128, ((half + 127) // 128) * 128)
        if new_tl >= L:
            new_tl = max(128, (L // 2 // 128) * 128)
        return tr, new_tl
    return tr, tl


def actnorm_forward(x, loc, scale, *, logdet=False):
    """ActNorm forward.

    x:     (N, C, H, W) or (N, C)
    loc:   (1, C, 1, 1)
    scale: (1, C, 1, 1)
    """
    squeeze = False
    if x.ndim == 2:
        x = x[:, :, None, None]
        squeeze = True
    N, C, H, W = x.shape
    itemsize = jnp.dtype(x.dtype).itemsize
    pack = _sublane_pack(x.dtype)
    block_bytes, vmem_cap, ncores = _hw_params()

    loc_f32 = loc.reshape(1, C).astype(jnp.float32)
    scale_f32 = scale.reshape(1, C).astype(jnp.float32)

    spatial = H * W
    if spatial >= 128:
        # Rows view: (N*C, H*W) -- lane-dense stores along the spatial extent.
        R, L = N * C, spatial
        x2d = x.reshape(R, L)
        loc2d = jnp.broadcast_to(loc_f32, (N, C)).reshape(R, 1)
        scale2d = jnp.broadcast_to(scale_f32, (N, C)).reshape(R, 1)
        params_along_rows = True
    else:
        # Small-spatial / 2-D path: (N, C*H*W) keeps the lane dim wide.
        R, L = N, C * spatial
        x2d = x.reshape(R, L)
        loc2d = jnp.broadcast_to(loc_f32[:, :, None], (1, C, spatial)).reshape(1, L)
        scale2d = jnp.broadcast_to(scale_f32[:, :, None], (1, C, spatial)).reshape(1, L)
        params_along_rows = False

    tr, tl = _choose_tiles(R, L, itemsize, block_bytes, pack)
    tr, tl = _maybe_split_for_cores(R, L, tr, tl, itemsize, pack, ncores)
    grid = (pl.cdiv(R, tr), pl.cdiv(L, tl))

    if params_along_rows:
        p_block = (tr, 1)
        p_map = lambda i, j: (i, 0)     # resident across the lane grid axis
    else:
        p_block = (1, tl)
        p_map = lambda i, j: (0, j)     # resident across the row grid axis

    # Resident VMEM: in + out blocks (double-buffered) plus tiny param blocks.
    block_b = tr * tl * itemsize
    param_b = (tr if params_along_rows else tl) * 4
    resident = 4 * block_b + 4 * param_b + (1 << 20)
    vmem_limit = None
    if resident > (16 << 20):           # above the most conservative default
        cap = max(32 << 20, (vmem_cap - (16 << 20)) if vmem_cap else (96 << 20))
        vmem_limit = int(min(max(resident + (8 << 20), 32 << 20), cap))

    cost = pl.CostEstimate(
        flops=2 * R * L,
        transcendentals=0,
        bytes_accessed=2 * R * L * itemsize + 2 * loc2d.size * 4,
    )

    h2d = pl.pallas_call(
        _actnorm_kernel,
        out_shape=jax.ShapeDtypeStruct((R, L), x.dtype),
        grid_spec=pltpu.PrefetchScalarGridSpec(
            num_scalar_prefetch=0,
            grid=grid,
            in_specs=[
                pl.BlockSpec((tr, tl), lambda i, j: (i, j)),
                pl.BlockSpec(p_block, p_map),
                pl.BlockSpec(p_block, p_map),
            ],
            out_specs=pl.BlockSpec((tr, tl), lambda i, j: (i, j)),
        ),
        compiler_params=pltpu.CompilerParams(
            dimension_semantics=("parallel", "parallel"),
            vmem_limit_bytes=vmem_limit),
        cost_estimate=cost,
    )(x2d, loc2d, scale2d)

    h = h2d.reshape(N, C, H, W)
    if squeeze:
        h = h[:, :, 0, 0]

    if logdet:
        # O(C), data-independent reduction in plain JAX, kept in f32.
        ld = (H * W) * jnp.sum(jnp.log(jnp.abs(scale.astype(jnp.float32))))
        return h, jnp.full((N,), ld, dtype=jnp.float32)
    return h


if __name__ == "__main__":
    key = jax.random.PRNGKey(0)
    kx, kl, ks = jax.random.split(key, 3)

    N, C, H, W = 2, 4, 16, 16
    x = jax.random.normal(kx, (N, C, H, W), dtype=jnp.float32)

    # Deterministic "initialized" parameters (module shapes: (1, C, 1, 1)).
    loc = 0.1 * jax.random.normal(kl, (1, C, 1, 1), dtype=jnp.float32)
    scale = 1.0 + 0.1 * jax.random.normal(ks, (1, C, 1, 1), dtype=jnp.float32)

    # 4-D path (with logdet).
    h, logdet_val = actnorm_forward(x, loc, scale, logdet=True)
    h = jax.block_until_ready(h)
    logdet_val = jax.block_until_ready(logdet_val)

    h_ref = scale * (x + loc)
    logdet_ref = (H * W) * jnp.sum(jnp.log(jnp.abs(scale))) * jnp.ones((N,), jnp.float32)

    assert h.shape == (N, C, H, W)
    assert logdet_val.shape == (N,)
    assert jnp.allclose(h, h_ref, atol=1e-5, rtol=1e-5)
    assert jnp.allclose(logdet_val, logdet_ref, atol=1e-4, rtol=1e-5)

    # 2-D squeeze path (exercises the small-lane layout).
    x2 = jax.random.normal(jax.random.PRNGKey(1), (N, C), dtype=jnp.float32)
    h2 = jax.block_until_ready(actnorm_forward(x2, loc, scale, logdet=False))
    h2_ref = (scale * (x2[:, :, None, None] + loc))[:, :, 0, 0]
    assert h2.shape == (N, C)
    assert jnp.allclose(h2, h2_ref, atol=1e-5, rtol=1e-5)

    print("KERNEL_OK")
</pallas_src>

<mosaic_0001>
module attributes {stable_mosaic.version = 11 : i64} {
  func.func @_actnorm_kernel(%arg0: i32, %arg1: i32, %arg2: memref<8x256xf32, #tpu.memory_space<vmem>>, %arg3: memref<8x1xf32, #tpu.memory_space<vmem>>, %arg4: memref<8x1xf32, #tpu.memory_space<vmem>>, %arg5: memref<8x256xf32, #tpu.memory_space<vmem>>) attributes {dimension_semantics = [#tpu.dimension_semantics<parallel>, #tpu.dimension_semantics<parallel>], iteration_bounds = array<i64: 1, 1>, scalar_prefetch = 0 : i64, scratch_operands = 0 : i64, tpu.core_type = #tpu.core_type<tc>, window_params = [{transform_indices = @transform_0, window_bounds = array<i64: 8, 256>}, {transform_indices = @transform_1, window_bounds = array<i64: 8, 1>}, {transform_indices = @transform_2, window_bounds = array<i64: 8, 1>}, {transform_indices = @transform_3, window_bounds = array<i64: 8, 256>}]} {
    %c0 = arith.constant 0 : index
    %c0_0 = arith.constant 0 : index
    %0 = vector.load %arg2[%c0, %c0_0] : memref<8x256xf32, #tpu.memory_space<vmem>>, vector<8x256xf32>
    %c0_1 = arith.constant 0 : index
    %c0_2 = arith.constant 0 : index
    %1 = vector.load %arg4[%c0_1, %c0_2] : memref<8x1xf32, #tpu.memory_space<vmem>>, vector<8x1xf32>
    %c0_3 = arith.constant 0 : index
    %c0_4 = arith.constant 0 : index
    %2 = vector.load %arg3[%c0_3, %c0_4] : memref<8x1xf32, #tpu.memory_space<vmem>>, vector<8x1xf32>
    %3 = vector.broadcast %2 : vector<8x1xf32> to vector<8x256xf32>
    %4 = arith.addf %0, %3 : vector<8x256xf32>
    %5 = vector.broadcast %1 : vector<8x1xf32> to vector<8x256xf32>
    %6 = arith.mulf %5, %4 : vector<8x256xf32>
    %c0_5 = arith.constant 0 : index
    %c0_6 = arith.constant 0 : index
    %7 = vector.load %arg5[%c0_5, %c0_6] : memref<8x256xf32, #tpu.memory_space<vmem>>, vector<8x256xf32>
    tpu.vector_store %arg5[%c0_5, %c0_6], %6 {strides = array<i32>} : memref<8x256xf32, #tpu.memory_space<vmem>>, vector<8x256xf32>,
    return
  }
  func.func @transform_0(%arg0: i32, %arg1: i32) -> (i32, i32) {
    %c0_i32 = arith.constant 0 : i32
    return %arg0, %arg1 : i32, i32
  }
  func.func @transform_1(%arg0: i32, %arg1: i32) -> (i32, i32) {
    %c0_i32 = arith.constant 0 : i32
    %c0_i32_0 = arith.constant 0 : i32
    return %arg0, %c0_i32 : i32, i32
  }
  func.func @transform_2(%arg0: i32, %arg1: i32) -> (i32, i32) {
    %c0_i32 = arith.constant 0 : i32
    %c0_i32_0 = arith.constant 0 : i32
    return %arg0, %c0_i32 : i32, i32
  }
  func.func @transform_3(%arg0: i32, %arg1: i32) -> (i32, i32) {
    %c0_i32 = arith.constant 0 : i32
    return %arg0, %arg1 : i32, i32
  }
}

</mosaic_0001>

<bundles_post_ra>
// kernel: tpu_custom_call.1
= control target key start
LH: loop header
LB: loop body
LE: loop exit
PB: predicated region body
PF: predicated region fallthrough
CT: control target
= control target key end

     0   :  { %v74_v1 = vmov 0   ;;  %s111_s0 = inlined_call_operand.vmem [shape: f32[8,256], index: 0, kind: input, shape index: {}]   ;;  %s112_s1 = inlined_call_operand.vmem [shape: f32[8,1], index: 1, kind: input, shape index: {}]   ;;  %s113_s2 = inlined_call_operand.vmem [shape: f32[8,1], index: 2, kind: input, shape index: {}]   ;;  %s114_s3 = inlined_call_operand.hbm [shape: f32[8,256], index: 3, kind: output, shape index: {}]  }
   0x1   :  { %v18_v0 = vld [vmem:[%s112_s1] sm:$0xff]  ;;  %51 = vset.pattern.permute.xlu0 %v74_v1 }
   0x2   :  { %8 = vsyncpa [#allocation3], 0  ;;  %21 = vperm.xlu0 %51, %v18_v0   ;;  %v17_v2 = vld [vmem:[%s113_s2] sm:$0xff]  ;;  %v16_v5 = vld [vmem:[%s111_s0 + $0x8] sm:$0xff]  ;;  %s75_s20 = smov [#allocation2]  }
   0x3   :  { %v15_v4 = vld [vmem:[%s111_s0] sm:$0xff]  ;;  %s41_s1 = sshll.u32 %s75_s20, 4  ;;  %s42_s1 = int_to_ptr.vmem [resolvable:$true] %s41_s1 }
   0x4   :  { %s52_s2 = scalar_lea.vmem %s42_s1, 256  ;;  %p57_p1 = scmp.lt.s32.totalorder %s42_s1, %s42_s1 }
   0x5   :  { %p53_p0 = scmp.ne.s32.totalorder %s42_s1, %s52_s2  ;;  %p58_p2 = scmp.lt.s32.totalorder %s52_s2, %s52_s2 }
   0x6   :  { %28 = vperm.xlu0 %51, %v17_v2  }
   0x7   :  { %p59_p3 = por %p58_p2, %p57_p1 }
   0x9   :  { %p60_p4 = pnand %p59_p3, %p53_p0 }
  0x7d   :  { %v22_v3 = vpop.permute.xlu0 %21 }
  0x7e   :  { %v24_v6 = vadd.f32 %v22_v3, %v15_v4  ;;  %v25_v7 = vadd.f32 %v22_v3, %v16_v5 }
  0x81   :  { %v29_v8 = vpop.permute.xlu0 %28 }
  0x82   :  { %v31_v9 = vmul.f32 %v29_v8, %v24_v6  ;;  %v32_v10 = vmul.f32 %v29_v8, %v25_v7 }
  0x84   :  { %33 = vst [vmem:[#allocation2] sm:$0xff] %v31_v9  ;;  %34 = vst [vmem:[#allocation2 + $0x8] sm:$0xff] %v32_v10 }
  0x85   :  { %63 = shalt.err (!%p60_p4)
}
  0x86   :  { %44 = dma.vmem_to_hbm [thread:$0]  %s42_s1, 256, %s114_s3, [#allocation3]  }
  0x87   :  { %72 = dma.done.wait [#allocation3], 256  }
  0x88   :  { %73 = vsyncadd [#allocation3], 4294967040 }
  0x89   :  { %48 = vsyncpa [#allocation3], 1 }

</bundles_post_ra>
